<compile_context>
chip_gen: v6e
topology: v6e:2x2x1
jax: 0.10.0
libtpu: 0.0.40
codegen_flags: <defaults>
</compile_context>

<pallas_src>
import jax
import jax.numpy as jnp
from jax.experimental import pallas as pl
from jax.experimental.pallas import tpu as pltpu


def _round_up(x: int, m: int) -> int:
    return ((x + m - 1) // m) * m


def decoder_kernel(z_ref, w1_ref, b1_ref, w2_ref, b2_ref,
                   w3_ref, b3_ref, wo_ref, bo_ref, out_ref):
    z = z_ref[...]                       # [tm, latent]  f32
    latent = z.shape[1]

    # fc1 + ReLU: K = latent_dim is tiny (2), so a full MXU push is almost
    # entirely wasted.  Do it as broadcast multiply-adds on the VPU in f32.
    h = b1_ref[...] + z[:, 0:1] * w1_ref[0:1, :]          # [tm, hidden]
    for k in range(1, latent):                            # static unroll
        h = h + z[:, k:k + 1] * w1_ref[k:k + 1, :]
    h = jnp.maximum(h, 0.0)

    # fc2 + ReLU (bf16 MXU operands, f32 accumulation, f32 elementwise).
    h = jnp.dot(h.astype(jnp.bfloat16), w2_ref[...],
                preferred_element_type=jnp.float32) + b2_ref[...]
    h = jnp.maximum(h, 0.0)

    # fc3 + ReLU
    h = jnp.dot(h.astype(jnp.bfloat16), w3_ref[...],
                preferred_element_type=jnp.float32) + b3_ref[...]
    h = jnp.maximum(h, 0.0)

    # fc_out + sigmoid (output features are padded to a multiple of 128, so
    # this store is lane-dense / unmasked).
    logits = jnp.dot(h.astype(jnp.bfloat16), wo_ref[...],
                     preferred_element_type=jnp.float32) + bo_ref[...]
    out_ref[...] = jax.nn.sigmoid(logits)


def decoder_forward(z, params, *, block_rows=512):
    """z: [B, latent_dim] float32. params: dict of f32 weights/biases
    (weights stored pre-transposed as [in_features, out_features])."""
    B, latent = z.shape
    hidden = params["w1"].shape[1]
    output_dim = params["wo"].shape[1]

    # --- lane-dense output padding (784 -> 896 for MNIST) -----------------
    out_pad = _round_up(output_dim, 128)
    wo = params["wo"]
    bo = params["bo"]
    if out_pad != output_dim:
        wo = jnp.pad(wo, ((0, 0), (0, out_pad - output_dim)))
        bo = jnp.pad(bo, ((0, 0), (0, out_pad - output_dim)))

    # --- dtypes: bf16 MXU operands, f32 biases / fc1 -----------------------
    w1 = params["w1"].astype(jnp.float32)     # fc1 runs on the VPU in f32
    b1 = params["b1"].astype(jnp.float32)
    w2 = params["w2"].astype(jnp.bfloat16)
    b2 = params["b2"].astype(jnp.float32)
    w3 = params["w3"].astype(jnp.bfloat16)
    b3 = params["b3"].astype(jnp.float32)
    wo = wo.astype(jnp.bfloat16)
    bo = bo.astype(jnp.float32)

    # --- batch tiling -------------------------------------------------------
    tm = min(block_rows, _round_up(B, 8))     # rows per tile, multiple of 8
    B_pad = _round_up(B, tm)
    if B_pad != B:
        z = jnp.pad(z, ((0, B_pad - B), (0, 0)))
    grid = (B_pad // tm,)

    def resident(shape):
        # Constant index map -> block stays resident in VMEM across the grid.
        return pl.BlockSpec(shape, lambda i: (0, 0))

    flops = 2 * B_pad * (latent * hidden + 2 * hidden * hidden + hidden * out_pad)
    bytes_accessed = (z.size * 4 + B_pad * out_pad * 4
                      + w1.size * 4 + w2.size * 2 + w3.size * 2 + wo.size * 2
                      + (b1.size + b2.size + b3.size + bo.size) * 4)

    out = pl.pallas_call(
        decoder_kernel,
        out_shape=jax.ShapeDtypeStruct((B_pad, out_pad), jnp.float32),
        grid=grid,
        in_specs=[
            pl.BlockSpec((tm, latent), lambda i: (i, 0)),
            resident(w1.shape), resident(b1.shape),
            resident(w2.shape), resident(b2.shape),
            resident(w3.shape), resident(b3.shape),
            resident(wo.shape), resident(bo.shape),
        ],
        out_specs=pl.BlockSpec((tm, out_pad), lambda i: (i, 0)),
        compiler_params=pltpu.CompilerParams(
            dimension_semantics=("parallel",)),
        cost_estimate=pl.CostEstimate(
            flops=flops,
            transcendentals=B_pad * out_pad,
            bytes_accessed=bytes_accessed),
    )(z, w1, b1, w2, b2, w3, b3, wo, bo)

    return out[:B, :output_dim]


def init_params(key, output_dim, hidden_dim, latent_dim):
    """Deterministic parameter init (PyTorch-Linear-like uniform fan-in)."""
    def linear(k, fan_in, fan_out):
        kw, kb = jax.random.split(k)
        bound = 1.0 / jnp.sqrt(fan_in)
        # Stored already transposed: [in, out]
        w = jax.random.uniform(kw, (fan_in, fan_out), jnp.float32, -bound, bound)
        b = jax.random.uniform(kb, (1, fan_out), jnp.float32, -bound, bound)
        return w, b

    k1, k2, k3, k4 = jax.random.split(key, 4)
    w1, b1 = linear(k1, latent_dim, hidden_dim)
    w2, b2 = linear(k2, hidden_dim, hidden_dim)
    w3, b3 = linear(k3, hidden_dim, hidden_dim)
    wo, bo = linear(k4, hidden_dim, output_dim)
    return {"w1": w1, "b1": b1, "w2": w2, "b2": b2,
            "w3": w3, "b3": b3, "wo": wo, "bo": bo}


def decoder_ref_bf16(z, params):
    """Pure-JAX reference mimicking the kernel's numerics (bf16 MXU inputs,
    f32 accumulation), for tight validation."""
    h = jax.nn.relu(z @ params["w1"] + params["b1"])
    h = jax.nn.relu(jnp.dot(h.astype(jnp.bfloat16),
                            params["w2"].astype(jnp.bfloat16),
                            preferred_element_type=jnp.float32) + params["b2"])
    h = jax.nn.relu(jnp.dot(h.astype(jnp.bfloat16),
                            params["w3"].astype(jnp.bfloat16),
                            preferred_element_type=jnp.float32) + params["b3"])
    logits = jnp.dot(h.astype(jnp.bfloat16),
                     params["wo"].astype(jnp.bfloat16),
                     preferred_element_type=jnp.float32) + params["bo"]
    return jax.nn.sigmoid(logits)


def decoder_ref_f32(z, params):
    """Full-precision reference (sanity bound only)."""
    h = jax.nn.relu(z @ params["w1"] + params["b1"])
    h = jax.nn.relu(h @ params["w2"] + params["b2"])
    h = jax.nn.relu(h @ params["w3"] + params["b3"])
    return jax.nn.sigmoid(h @ params["wo"] + params["bo"])


if __name__ == "__main__":
    hidden_dim = 32
    latent_dim = 2
    output_dim = 784   # MNIST 28*28
    batch = 8

    key = jax.random.PRNGKey(0)
    kp, kz, kz2 = jax.random.split(key, 3)
    params = init_params(kp, output_dim, hidden_dim, latent_dim)

    # Small-shape run (matches the module defaults).
    z = jax.random.normal(kz, (batch, latent_dim), jnp.float32)
    x_hat = jax.block_until_ready(decoder_forward(z, params))
    assert x_hat.shape == (batch, output_dim)
    assert jnp.allclose(x_hat, decoder_ref_bf16(z, params), atol=1e-3, rtol=1e-3)
    assert jnp.allclose(x_hat, decoder_ref_f32(z, params), atol=3e-2, rtol=3e-2)

    # Larger, non-multiple batch to exercise the grid + padding paths.
    z_big = jax.random.normal(kz2, (1037, latent_dim), jnp.float32)
    x_big = jax.block_until_ready(decoder_forward(z_big, params))
    assert x_big.shape == (1037, output_dim)
    assert jnp.allclose(x_big, decoder_ref_bf16(z_big, params), atol=1e-3, rtol=1e-3)

    print("KERNEL_OK")
</pallas_src>

<mosaic_0001>
module attributes {stable_mosaic.version = 11 : i64} {
  func.func @decoder_kernel(%arg0: i32, %arg1: memref<8x2xf32, #tpu.memory_space<vmem>>, %arg2: memref<2x32xf32, #tpu.memory_space<vmem>>, %arg3: memref<1x32xf32, #tpu.memory_space<vmem>>, %arg4: memref<32x32xbf16, #tpu.memory_space<vmem>>, %arg5: memref<1x32xf32, #tpu.memory_space<vmem>>, %arg6: memref<32x32xbf16, #tpu.memory_space<vmem>>, %arg7: memref<1x32xf32, #tpu.memory_space<vmem>>, %arg8: memref<32x896xbf16, #tpu.memory_space<vmem>>, %arg9: memref<1x896xf32, #tpu.memory_space<vmem>>, %arg10: memref<8x896xf32, #tpu.memory_space<vmem>>) attributes {dimension_semantics = [#tpu.dimension_semantics<parallel>], iteration_bounds = array<i64: 1>, scalar_prefetch = 0 : i64, scratch_operands = 0 : i64, tpu.core_type = #tpu.core_type<tc>, window_params = [{transform_indices = @transform_0, window_bounds = array<i64: 8, 2>}, {pipeline_mode = #tpu.pipeline_mode<synchronous>, transform_indices = @transform_1, window_bounds = array<i64: 2, 32>}, {pipeline_mode = #tpu.pipeline_mode<synchronous>, transform_indices = @transform_2, window_bounds = array<i64: 1, 32>}, {pipeline_mode = #tpu.pipeline_mode<synchronous>, transform_indices = @transform_3, window_bounds = array<i64: 32, 32>}, {pipeline_mode = #tpu.pipeline_mode<synchronous>, transform_indices = @transform_4, window_bounds = array<i64: 1, 32>}, {pipeline_mode = #tpu.pipeline_mode<synchronous>, transform_indices = @transform_5, window_bounds = array<i64: 32, 32>}, {pipeline_mode = #tpu.pipeline_mode<synchronous>, transform_indices = @transform_6, window_bounds = array<i64: 1, 32>}, {pipeline_mode = #tpu.pipeline_mode<synchronous>, transform_indices = @transform_7, window_bounds = array<i64: 32, 896>}, {pipeline_mode = #tpu.pipeline_mode<synchronous>, transform_indices = @transform_8, window_bounds = array<i64: 1, 896>}, {transform_indices = @transform_9, window_bounds = array<i64: 8, 896>}]} {
    %c0 = arith.constant 0 : index
    %c0_0 = arith.constant 0 : index
    %0 = vector.load %arg1[%c0, %c0_0] : memref<8x2xf32, #tpu.memory_space<vmem>>, vector<8x2xf32>
    %c0_1 = arith.constant 0 : index
    %c0_2 = arith.constant 0 : index
    %1 = vector.load %arg3[%c0_1, %c0_2] : memref<1x32xf32, #tpu.memory_space<vmem>>, vector<1x32xf32>
    %2 = vector.extract_strided_slice %0 {offsets = [0, 0], sizes = [8, 1], strides = [1, 1]} : vector<8x2xf32> to vector<8x1xf32>
    %c0_3 = arith.constant 0 : index
    %c0_4 = arith.constant 0 : index
    %3 = vector.load %arg2[%c0_3, %c0_4] : memref<2x32xf32, #tpu.memory_space<vmem>>, vector<1x32xf32>
    %4 = vector.broadcast %2 : vector<8x1xf32> to vector<8x32xf32>
    %5 = vector.broadcast %3 : vector<1x32xf32> to vector<8x32xf32>
    %6 = arith.mulf %4, %5 : vector<8x32xf32>
    %7 = vector.broadcast %1 : vector<1x32xf32> to vector<8x32xf32>
    %8 = arith.addf %7, %6 : vector<8x32xf32>
    %9 = vector.extract_strided_slice %0 {offsets = [0, 1], sizes = [8, 1], strides = [1, 1]} : vector<8x2xf32> to vector<8x1xf32>
    %c1 = arith.constant 1 : index
    %c0_5 = arith.constant 0 : index
    %10 = vector.load %arg2[%c1, %c0_5] : memref<2x32xf32, #tpu.memory_space<vmem>>, vector<1x32xf32>
    %11 = vector.broadcast %9 : vector<8x1xf32> to vector<8x32xf32>
    %12 = vector.broadcast %10 : vector<1x32xf32> to vector<8x32xf32>
    %13 = arith.mulf %11, %12 : vector<8x32xf32>
    %14 = arith.addf %8, %13 : vector<8x32xf32>
    %cst = arith.constant 0.000000e+00 : f32
    %15 = vector.broadcast %cst : f32 to vector<8x32xf32>
    %16 = arith.maximumf %14, %15 : vector<8x32xf32>
    %17 = arith.truncf %16 : vector<8x32xf32> to vector<8x32xbf16>
    %c0_6 = arith.constant 0 : index
    %c0_7 = arith.constant 0 : index
    %18 = vector.load %arg4[%c0_6, %c0_7] : memref<32x32xbf16, #tpu.memory_space<vmem>>, vector<32x32xbf16>
    %cst_8 = arith.constant dense<0.000000e+00> : vector<8x32xf32>
    %19 = tpu.matmul %17, %18, %cst_8 {dimension_numbers = #tpu.dot_dimension_numbers<[1], [0], [0], [1], [0, 0, 1, 1], [], []>} : vector<8x32xbf16>, vector<32x32xbf16>, vector<8x32xf32> -> vector<8x32xf32>
    %c0_9 = arith.constant 0 : index
    %c0_10 = arith.constant 0 : index
    %20 = vector.load %arg5[%c0_9, %c0_10] : memref<1x32xf32, #tpu.memory_space<vmem>>, vector<1x32xf32>
    %21 = vector.broadcast %20 : vector<1x32xf32> to vector<8x32xf32>
    %22 = arith.addf %19, %21 : vector<8x32xf32>
    %cst_11 = arith.constant 0.000000e+00 : f32
    %23 = vector.broadcast %cst_11 : f32 to vector<8x32xf32>
    %24 = arith.maximumf %22, %23 : vector<8x32xf32>
    %25 = arith.truncf %24 : vector<8x32xf32> to vector<8x32xbf16>
    %c0_12 = arith.constant 0 : index
    %c0_13 = arith.constant 0 : index
    %26 = vector.load %arg6[%c0_12, %c0_13] : memref<32x32xbf16, #tpu.memory_space<vmem>>, vector<32x32xbf16>
    %cst_14 = arith.constant dense<0.000000e+00> : vector<8x32xf32>
    %27 = tpu.matmul %25, %26, %cst_14 {dimension_numbers = #tpu.dot_dimension_numbers<[1], [0], [0], [1], [0, 0, 1, 1], [], []>} : vector<8x32xbf16>, vector<32x32xbf16>, vector<8x32xf32> -> vector<8x32xf32>
    %c0_15 = arith.constant 0 : index
    %c0_16 = arith.constant 0 : index
    %28 = vector.load %arg7[%c0_15, %c0_16] : memref<1x32xf32, #tpu.memory_space<vmem>>, vector<1x32xf32>
    %29 = vector.broadcast %28 : vector<1x32xf32> to vector<8x32xf32>
    %30 = arith.addf %27, %29 : vector<8x32xf32>
    %cst_17 = arith.constant 0.000000e+00 : f32
    %31 = vector.broadcast %cst_17 : f32 to vector<8x32xf32>
    %32 = arith.maximumf %30, %31 : vector<8x32xf32>
    %33 = arith.truncf %32 : vector<8x32xf32> to vector<8x32xbf16>
    %c0_18 = arith.constant 0 : index
    %c0_19 = arith.constant 0 : index
    %34 = vector.load %arg8[%c0_18, %c0_19] : memref<32x896xbf16, #tpu.memory_space<vmem>>, vector<32x896xbf16>
    %cst_20 = arith.constant dense<0.000000e+00> : vector<8x896xf32>
    %35 = tpu.matmul %33, %34, %cst_20 {dimension_numbers = #tpu.dot_dimension_numbers<[1], [0], [0], [1], [0, 0, 1, 1], [], []>} : vector<8x32xbf16>, vector<32x896xbf16>, vector<8x896xf32> -> vector<8x896xf32>
    %c0_21 = arith.constant 0 : index
    %c0_22 = arith.constant 0 : index
    %36 = vector.load %arg9[%c0_21, %c0_22] : memref<1x896xf32, #tpu.memory_space<vmem>>, vector<1x896xf32>
    %37 = vector.broadcast %36 : vector<1x896xf32> to vector<8x896xf32>
    %38 = arith.addf %35, %37 : vector<8x896xf32>
    %39 = arith.negf %38 : vector<8x896xf32>
    %40 = math.exp %39 : vector<8x896xf32>
    %cst_23 = arith.constant 1.000000e+00 : f32
    %41 = vector.broadcast %cst_23 : f32 to vector<8x896xf32>
    %42 = arith.addf %41, %40 : vector<8x896xf32>
    %43 = arith.divf %41, %42 : vector<8x896xf32>
    %c0_24 = arith.constant 0 : index
    %c0_25 = arith.constant 0 : index
    %44 = vector.load %arg10[%c0_24, %c0_25] : memref<8x896xf32, #tpu.memory_space<vmem>>, vector<8x896xf32>
    tpu.vector_store %arg10[%c0_24, %c0_25], %43 {strides = array<i32>} : memref<8x896xf32, #tpu.memory_space<vmem>>, vector<8x896xf32>,
    return
  }
  func.func @transform_0(%arg0: i32) -> (i32, i32) {
    %c0_i32 = arith.constant 0 : i32
    %c0_i32_0 = arith.constant 0 : i32
    return %arg0, %c0_i32 : i32, i32
  }
  func.func @transform_1(%arg0: i32) -> (i32, i32) {
    %c0_i32 = arith.constant 0 : i32
    %c0_i32_0 = arith.constant 0 : i32
    %c0_i32_1 = arith.constant 0 : i32
    return %c0_i32, %c0_i32_0 : i32, i32
  }
  func.func @transform_2(%arg0: i32) -> (i32, i32) {
    %c0_i32 = arith.constant 0 : i32
    %c0_i32_0 = arith.constant 0 : i32
    %c0_i32_1 = arith.constant 0 : i32
    return %c0_i32, %c0_i32_0 : i32, i32
  }
  func.func @transform_3(%arg0: i32) -> (i32, i32) {
    %c0_i32 = arith.constant 0 : i32
    %c0_i32_0 = arith.constant 0 : i32
    %c0_i32_1 = arith.constant 0 : i32
    return %c0_i32, %c0_i32_0 : i32, i32
  }
  func.func @transform_4(%arg0: i32) -> (i32, i32) {
    %c0_i32 = arith.constant 0 : i32
    %c0_i32_0 = arith.constant 0 : i32
    %c0_i32_1 = arith.constant 0 : i32
    return %c0_i32, %c0_i32_0 : i32, i32
  }
  func.func @transform_5(%arg0: i32) -> (i32, i32) {
    %c0_i32 = arith.constant 0 : i32
    %c0_i32_0 = arith.constant 0 : i32
    %c0_i32_1 = arith.constant 0 : i32
    return %c0_i32, %c0_i32_0 : i32, i32
  }
  func.func @transform_6(%arg0: i32) -> (i32, i32) {
    %c0_i32 = arith.constant 0 : i32
    %c0_i32_0 = arith.constant 0 : i32
    %c0_i32_1 = arith.constant 0 : i32
    return %c0_i32, %c0_i32_0 : i32, i32
  }
  func.func @transform_7(%arg0: i32) -> (i32, i32) {
    %c0_i32 = arith.constant 0 : i32
    %c0_i32_0 = arith.constant 0 : i32
    %c0_i32_1 = arith.constant 0 : i32
    return %c0_i32, %c0_i32_0 : i32, i32
  }
  func.func @transform_8(%arg0: i32) -> (i32, i32) {
    %c0_i32 = arith.constant 0 : i32
    %c0_i32_0 = arith.constant 0 : i32
    %c0_i32_1 = arith.constant 0 : i32
    return %c0_i32, %c0_i32_0 : i32, i32
  }
  func.func @transform_9(%arg0: i32) -> (i32, i32) {
    %c0_i32 = arith.constant 0 : i32
    %c0_i32_0 = arith.constant 0 : i32
    return %arg0, %c0_i32 : i32, i32
  }
}

</mosaic_0001>

<bundles_post_ra>
// kernel: tpu_custom_call.1
= control target key start
LH: loop header
LB: loop body
LE: loop exit
PB: predicated region body
PF: predicated region fallthrough
CT: control target
= control target key end

     0   :  { %14 = vsyncpa [#allocation3], 0  ;;  %s1007_s0 = inlined_call_operand.vmem [shape: f32[8,2], index: 0, kind: input, shape index: {}]   ;;  %s1008_s1 = inlined_call_operand.hbm [shape: f32[2,32], index: 1, kind: input, shape index: {}]   ;;  %s1009_s2 = inlined_call_operand.vmem [shape: f32[1,32], index: 2, kind: input, shape index: {}]   ;;  %s1010_s3 = inlined_call_operand.hbm [shape: bf16[32,32], index: 3, kind: input, shape index: {}]   ;;  %s1011_s4 = inlined_call_operand.hbm [shape: f32[1,32], index: 4, kind: input, shape index: {}]   ;;  %s1012_s5 = inlined_call_operand.vmem [shape: bf16[32,32], index: 5, kind: input, shape index: {}]   ;;  %s1013_s6 = inlined_call_operand.hbm [shape: f32[1,32], index: 6, kind: input, shape index: {}]   ;;  %s1014_s7 = inlined_call_operand.hbm [shape: bf16[32,896], index: 7, kind: input, shape index: {}]   ;;  %s1015_s8 = inlined_call_operand.vmem [shape: f32[1,896], index: 8, kind: input, shape index: {}]   ;;  %s1016_s9 = inlined_call_operand.hbm [shape: f32[8,896], index: 9, kind: output, shape index: {}]  }
   0x1   :  { %15 = vsyncpa [#allocation6], 0 }
   0x2   :  { %16 = vsyncpa [#allocation9], 0 }
   0x3   :  { %17 = vsyncpa [#allocation4], 0  ;;  %s888_s30 = smov [#allocation5]  }
   0x4   :  { %s37_s10 = sshll.u32 %s888_s30, 4  ;;  %s38_s10 = int_to_ptr.vmem [resolvable:$true] %s37_s10 }
   0x5   :  { %s768_s11 = scalar_lea.vmem %s38_s10, 256  ;;  %p773_p1 = scmp.lt.s32.totalorder %s38_s10, %s38_s10 }
   0x6   :  { %p769_p0 = scmp.ne.s32.totalorder %s38_s10, %s768_s11  ;;  %p774_p2 = scmp.lt.s32.totalorder %s768_s11, %s768_s11 }
   0x8   :  { %p775_p3 = por %p774_p2, %p773_p1 }
   0xa   :  { %p776_p4 = pnand %p775_p3, %p769_p0 }
   0xc   :  { %779 = shalt.err (!%p776_p4)
}
   0xd   :  { %s889_s12 = smov 64   ;;  %s890_s13 = smov 4  }
   0xe   :  { %43 = dma.hbm_to_vmem [thread:$0]  %s1010_s3, 256, %s38_s10, [#allocation6], %s889_s12, %s889_s12, %s890_s13  }
   0xf   :  { %s891_s16 = smov [#allocation8]   ;;  %s892_s18 = smov [#allocation2]  }
  0x10   :  { %s62_s17 = sshll.u32 %s891_s16, 4  ;;  %s26_s19 = sshll.u32 %s892_s18, 4  ;;  %s63_s17 = int_to_ptr.vmem [resolvable:$true] %s62_s17  ;;  %s27_s19 = int_to_ptr.vmem [resolvable:$true] %s26_s19 }
  0x11   :  { %s788_s20 = scalar_lea.vmem %s63_s17, 16  ;;  %s792_s21 = scalar_lea.vmem %s63_s17, 32 }
  0x12   :  { %p789_p5 = scmp.ne.s32.totalorder %s63_s17, %s788_s20  ;;  %p793_p6 = scmp.lt.s32.totalorder %s63_s17, %s63_s17 }
  0x13   :  { %p794_p7 = scmp.lt.s32.totalorder %s792_s21, %s788_s20 }
  0x15   :  { %p795_p8 = por %p794_p7, %p793_p6 }
  0x17   :  { %p796_p9 = pnand %p795_p8, %p789_p5 }
  0x19   :  { %799 = shalt.err (!%p796_p9)
}
  0x1a   :  { %65 = dma.hbm_to_vmem [thread:$0]  %s1013_s6, 16, %s63_s17, [#allocation9]  }
  0x1b   :  { %s808_s24 = scalar_lea.vmem %s27_s19, 32  ;;  %p813_p11 = scmp.lt.s32.totalorder %s27_s19, %s27_s19 }
  0x1c   :  { %p809_p10 = scmp.ne.s32.totalorder %s27_s19, %s808_s24  ;;  %p814_p12 = scmp.lt.s32.totalorder %s808_s24, %s808_s24 }
  0x1e   :  { %p815_p13 = por %p814_p12, %p813_p11 }
  0x20   :  { %p816_p0 = pnand %p815_p13, %p809_p10 }
  0x22   :  { %819 = shalt.err (!%p816_p0)
}
  0x23   :  { %29 = dma.hbm_to_vmem [thread:$0]  %s1008_s1, 32, %s27_s19, [#allocation3]  }
  0x24   :  { %s893_s26 = smov [#allocation7]   ;;  %s894_s28 = smov [#allocation10]  }
  0x25   :  { %s50_s27 = sshll.u32 %s893_s26, 4  ;;  %s71_s29 = sshll.u32 %s894_s28, 4  ;;  %s51_s27 = int_to_ptr.vmem [resolvable:$true] %s50_s27  ;;  %s72_s29 = int_to_ptr.vmem [resolvable:$true] %s71_s29 }
  0x26   :  { %s828_s30 = scalar_lea.vmem %s51_s27, 16  ;;  %s832_s6 = scalar_lea.vmem %s51_s27, 32 }
  0x27   :  { %p829_p1 = scmp.ne.s32.totalorder %s51_s27, %s828_s30  ;;  %p833_p2 = scmp.lt.s32.totalorder %s51_s27, %s51_s27 }
  0x28   :  { %p834_p3 = scmp.lt.s32.totalorder %s832_s6, %s828_s30 }
  0x2a   :  { %p835_p4 = por %p834_p3, %p833_p2 }
  0x2c   :  { %p836_p5 = pnand %p835_p4, %p829_p1 }
  0x2e   :  { %839 = shalt.err (!%p836_p5)
}
  0x2f   :  { %53 = dma.hbm_to_vmem [thread:$0]  %s1011_s4, 16, %s51_s27, [#allocation6]  }
  0x30   :  { %s848_s12 = scalar_lea.vmem %s72_s29, 1792  ;;  %p853_p7 = scmp.lt.s32.totalorder %s72_s29, %s72_s29 }
  0x31   :  { %p849_p6 = scmp.ne.s32.totalorder %s72_s29, %s848_s12  ;;  %p854_p8 = scmp.lt.s32.totalorder %s848_s12, %s848_s12 }
  0x33   :  { %p855_p9 = por %p854_p8, %p853_p7 }
  0x35   :  { %p856_p10 = pnand %p855_p9, %p849_p6 }
  0x37   :  { %859 = shalt.err (!%p856_p10)
}
  0x38   :  { %s895_s1 = smov 448   ;;  %s896_s13 = smov 28  }
  0x39   :  { %77 = dma.hbm_to_vmem [thread:$0]  %s1014_s7, 1792, %s72_s29, [#allocation9], %s895_s1, %s895_s1, %s896_s13  }
  0x3a   :  { %880 = dma.done.wait [#allocation3], 32  }
  0x3b   :  { %881 = vsyncadd [#allocation3], 4294967264 }
  0x3c   :  { %882 = dma.done.wait [#allocation6], 272  }
  0x3d   :  { %883 = vsyncadd [#allocation6], 4294967024 }
  0x3e   :  { %884 = dma.done.wait [#allocation9], 1808  }
  0x3f   :  { %885 = vsyncadd [#allocation9], 4294965488  ;;  %v897_v0 = vmov 0   ;;  %v96_v1 = vld [vmem:[%s1007_s0] sm:$0xff]  ;;  %v708_v2 = vld [vmem:[#allocation5 + $0x8] sm:$0xff]   ;;  %v898_v3 = vmov 0.0   ;;  %v284_v49 = vlaneseq }
  0x40   :  { %706 = vset.pattern.permute.xlu0 %v897_v0  ;;  %668 = vmatprep.subr.bf16.mxu0 %v898_v3  ;;  %v899_v4 = vmov 1   ;;  %v709_v5 = vld [vmem:[#allocation5] sm:$0xff]   ;;  %vm900_vm0 = vmmov 0   ;;  %v623_v6 = vld [vmem:[#allocation2] ss:$0 sm:$0xff]  ;;  %vm152_vm1 = vcmask 261120  }
  0x41   :  { %101 = vperm.xlu0 %706, %v96_v1   ;;  %676 = vmatprep.subr.bf16.mxu1 %v898_v3  ;;  %v624_v9 = vld [vmem:[%s1009_s2] ss:$0 sm:$0xff]  ;;  %v625_v10 = vld [vmem:[#allocation2 + $0x1] ss:$0 sm:$0xff]  ;;  %v710_v17 = vld [vmem:[%s1012_s5 + $0x8] sm:$0xff]   ;;  %v285_v50 = vshrl.u32 %v284_v49, 7 }
  0x42   :  { %669 = vmatpush3.bf16.msra.mxu0 %v708_v2  ;;  %672 = vmatprep.mubr.msk.bf16.mxu0 %vm900_vm0, %v898_v3  ;;  %v711_v18 = vld [vmem:[%s1012_s5] sm:$0xff]   ;;  %v712_v19 = vld [vmem:[#allocation10 + $0x38] ss:$28 sps:$4 sm:$0xff]   ;;  %v717_v21 = vld [vmem:[#allocation10 + $0x44] ss:$28 sps:$4 sm:$0xff]  }
  0x43   :  { %670 = vmatprep.subr.bf16.mxu0 %v898_v3  ;;  %680 = vmatprep.mubr.msk.bf16.mxu1 %vm900_vm0, %v898_v3  ;;  %v714_v20 = vld [vmem:[#allocation10 + $0x3c] ss:$28 sps:$4 sm:$0xff]   ;;  %v720_v31 = vld [vmem:[#allocation10 + $0x4] ss:$28 sps:$4 sm:$0xff]   ;;  %v723_v32 = vld [vmem:[#allocation10 + $0xc] ss:$28 sps:$4 sm:$0xff]  }
  0x44   :  { %677 = vmatpush3.bf16.msra.mxu1 %v710_v17  ;;  %v626_v22 = vld [vmem:[#allocation7] ss:$0 sm:$0xff]  ;;  %v721_v34 = vld [vmem:[#allocation10 + $0x8] ss:$28 sps:$4 sm:$0xff]   ;;  %v630_v36 = vld [vmem:[#allocation8] ss:$0 sm:$0xff] }
  0x45   :  { %707 = vset.pattern.permute.xlu0 %v899_v4  ;;  %678 = vmatprep.subr.bf16.mxu1 %v898_v3  ;;  %v715_v28 = vld [vmem:[#allocation10 + $0x40] ss:$28 sps:$4 sm:$0xff]   ;;  %v726_v35 = vld [vmem:[#allocation10 + $0x4c] ss:$28 sps:$4 sm:$0xff]   ;;  %v730_v45 = vld [vmem:[#allocation10 + $0x14] ss:$28 sps:$4 sm:$0xff]  }
  0x46   :  { %118 = vperm.xlu0 %707, %v96_v1   ;;  %671 = vmatpush3.bf16.msra.mxu0 %v709_v5  ;;  %v718_v33 = vld [vmem:[#allocation10] ss:$28 sps:$4 sm:$0xff]   ;;  %v724_v42 = vld [vmem:[#allocation10 + $0x48] ss:$28 sps:$4 sm:$0xff]   ;;  %v727_v43 = vld [vmem:[#allocation10 + $0x50] ss:$28 sps:$4 sm:$0xff]  }
  0x47   :  { %406 = vmatprep.subr.bf16.mxu0 %v714_v20  ;;  %v728_v47 = vld [vmem:[#allocation10 + $0x10] ss:$28 sps:$4 sm:$0xff]   ;;  %v731_v48 = vld [vmem:[#allocation10 + $0x18] ss:$28 sps:$4 sm:$0xff]   ;;  %v286_v51 = vsub.s32 0, %v285_v50  ;;  %v294_v52 = vsub.s32 2, %v285_v50 }
  0x48   :  { %679 = vmatpush3.bf16.msra.mxu1 %v711_v18  ;;  %v282_v53 = vld [vmem:[%s1015_s8] sm:$0xff]  ;;  %v290_v54 = vsub.s32 1, %v285_v50  ;;  %v298_v55 = vsub.s32 3, %v285_v50  ;;  %v302_v62 = vsub.s32 4, %v285_v50  ;;  %v310_v1 = vsub.s32 6, %v285_v50  ;;  %s901_s8 = smov [#allocation11]  }
  0x49   :  { %447 = vmatprep.subr.bf16.mxu1 %v717_v21  ;;  %v287_v56 = vrot.slane %v282_v53, %v286_v51  ;;  %v295_v57 = vrot.slane %v282_v53, %v294_v52  ;;  %v306_v4 = vsub.s32 5, %v285_v50  ;;  %s612_s21 = sshll.u32 %s901_s8, 4  ;;  %s613_s21 = int_to_ptr.vmem [resolvable:$true] %s612_s21 }
  0x4a   :  { %v291_v58 = vrot.slane %v282_v53, %v290_v54  ;;  %v299_v59 = vrot.slane %v282_v53, %v298_v55  ;;  %s860_s22 = scalar_lea.vmem %s613_s21, 896  ;;  %p865_p12 = scmp.lt.s32.totalorder %s613_s21, %s613_s21 }
  0x4b   :  { %v307_v17 = vrot.slane %v282_v53, %v306_v4  ;;  %p861_p11 = scmp.ne.s32.totalorder %s613_s21, %s860_s22  ;;  %p866_p13 = scmp.lt.s32.totalorder %s860_s22, %s860_s22 }
  0x4d   :  { %p867_p0 = por %p866_p13, %p865_p12 }
  0x4f   :  { %p868_p1 = pnand %p867_p0, %p861_p11 }
  0xbc   :  { %v102_v7 = vpop.permute.xlu0 %101 }
  0xbd   :  { %v108_v8 = vmul.f32 %v623_v6, %v102_v7 }
  0xbf   :  { %v115_v12 = vadd.f32 %v624_v9, %v108_v8 }
  0xc1   :  { %v119_v11 = vpop.permute.xlu0 %118 }
  0xc2   :  { %v125_v13 = vmul.f32 %v625_v10, %v119_v11  ;;  %v303_v11 = vrot.slane %v282_v53, %v302_v62 }
  0xc4   :  { %v126_v14 = vadd.f32 %v125_v13, %v115_v12 }
  0xc6   :  { %v127_v15 = vmax.f32 %v126_v14, 0.0  ;;  %v311_v14 = vrot.slane %v282_v53, %v310_v1 }
  0xc8   :  { %v128_v16 = vpack.c.bf16 %v127_v15, %v127_v15 }
  0xca   :  { %673 = vmatmul.mubr.msk.bf16.vlgmr.msra.gmra.mxu0 %vm152_vm1, %v128_v16 }
  0xcb   :  { %426 = vmatprep.mubr.bf16.mxu0 %v897_v0  ;;  %407 = vmatpush1.bf16.msra.mxu0 %v712_v19 }
  0xcc   :  { %408 = vmatprep.subr.bf16.mxu0 %v720_v31 }
  0xcf   :  { %409 = vmatpush1.bf16.msra.mxu0 %v718_v33 }
  0xd0   :  { %488 = vmatprep.subr.bf16.mxu0 %v726_v35 }
 0x18a   :  { %v190_v23 = vpop.f32.mrf.mxu0 }
 0x18b   :  { %v191_v24 = vadd.f32 %v626_v22, %v190_v23 }
 0x18c   :  { %v674_v25 = vpop.f32.mrf.mxu0 }
 0x18d   :  { %v196_v26 = vmax.f32 %v191_v24, 0.0 }
 0x18e   :  { %v193_v27 = vpop.f32.mrf.mxu0 }
 0x18f   :  { %v197_v29 = vpack.c.bf16 %v196_v26, %v196_v26 }
 0x190   :  { %v675_v30 = vpop.f32.mrf.mxu0 }
 0x191   :  { %681 = vmatmul.mubr.msk.bf16.vlgmr.msra.gmra.mxu1 %vm152_vm1, %v197_v29 }
 0x192   :  { %448 = vmatpush1.bf16.msra.mxu1 %v715_v28  ;;  %467 = vmatprep.mubr.bf16.mxu1 %v897_v0 }
 0x193   :  { %449 = vmatprep.subr.bf16.mxu1 %v723_v32 }
 0x196   :  { %450 = vmatpush1.bf16.msra.mxu1 %v721_v34 }
 0x197   :  { %684 = vmatprep.subr.bf16.mxu1 %v898_v3 }
 0x251   :  { %v258_v37 = vpop.f32.mrf.mxu1 }
 0x252   :  { %v259_v38 = vadd.f32 %v630_v36, %v258_v37 }
 0x253   :  { %v682_v39 = vpop.f32.mrf.mxu1 }
 0x254   :  { %v264_v40 = vmax.f32 %v259_v38, 0.0 }
 0x255   :  { %v261_v41 = vpop.f32.mrf.mxu1 }
 0x256   :  { %v265_v44 = vpack.c.bf16 %v264_v40, %v264_v40 }
 0x257   :  { %v683_v46 = vpop.f32.mrf.mxu1 }
 0x258   :  { %648 = vmatmul.mubr.msk.bf16.vlgmr.msra.gmra.mxu0 %vm152_vm1, %v265_v44  ;;  %649 = vmatmul.mubr.msk.bf16.vlgmr.msra.gmra.mxu1 %vm152_vm1, %v265_v44 }
 0x259   :  { %489 = vmatpush1.bf16.msra.mxu0 %v724_v42  ;;  %685 = vmatpush3.bf16.msra.mxu1 %v727_v43 }
 0x25a   :  { %490 = vmatprep.subr.bf16.mxu0 %v730_v45  ;;  %686 = vmatprep.subr.bf16.mxu1 %v898_v3 }
 0x25b   :  { %508 = vmatprep.mubr.bf16.mxu0 %v897_v0  ;;  %688 = vmatprep.mubr.msk.bf16.mxu1 %vm900_vm0, %v898_v3 }
 0x25d   :  { %491 = vmatpush1.bf16.msra.mxu0 %v728_v47  ;;  %687 = vmatpush3.bf16.msra.mxu1 %v731_v48 }
 0x260   :  { %650 = vmatmul.mubr.msk.bf16.vlgmr.msra.gmra.mxu0 %vm152_vm1, %v265_v44  ;;  %689 = vmatmul.mubr.msk.bf16.vlgmr.msra.gmra.mxu1 %vm152_vm1, %v265_v44 }
 0x318   :  { %v428_v60 = vpop.f32.mrf.mxu0  ;;  %v469_v61 = vpop.f32.mrf.mxu1 }
 0x319   :  { %v429_v63 = vadd.f32 %v428_v60, %v287_v56  ;;  %v470_v0 = vadd.f32 %v469_v61, %v295_v57 }
 0x31a   :  { %v430_v2 = vpop.f32.mrf.mxu0  ;;  %v471_v3 = vpop.f32.mrf.mxu1 }
 0x31b   :  { %v652_v5 = vmul.f32 -1.442695, %v429_v63  ;;  %v654_v6 = vmul.f32 -1.442695, %v470_v0  ;;  %v431_v7 = vadd.f32 %v430_v2, %v291_v58  ;;  %v472_v8 = vadd.f32 %v471_v3, %v299_v59 }
 0x31c   :  { %v432_v9 = vpop.f32.mrf.mxu0  ;;  %v473_v10 = vpop.f32.mrf.mxu1 }
 0x31d   :  { %732 = vpow2.f32 %v652_v5  ;;  %v653_v12 = vmul.f32 -1.442695, %v431_v7  ;;  %v655_v13 = vmul.f32 -1.442695, %v472_v8 }
 0x31e   :  { %734 = vpow2.f32 %v654_v6  ;;  %v433_v15 = vpop.f32.mrf.mxu0  ;;  %v474_v16 = vpop.f32.mrf.mxu1 }
 0x31f   :  { %736 = vpow2.f32 %v653_v12 }
 0x320   :  { %738 = vpow2.f32 %v655_v13  ;;  %v510_v18 = vpop.f32.mrf.mxu0  ;;  %v551_v19 = vpop.f32.mrf.mxu1 }
 0x321   :  { %v511_v20 = vadd.f32 %v510_v18, %v303_v11  ;;  %v552_v21 = vadd.f32 %v551_v19, %v311_v14 }
 0x322   :  { %v512_v22 = vpop.f32.mrf.mxu0  ;;  %v690_v23 = vpop.f32.mrf.mxu1 }
 0x323   :  { %v656_v24 = vmul.f32 -1.442695, %v511_v20  ;;  %v658_v25 = vmul.f32 -1.442695, %v552_v21  ;;  %v513_v26 = vadd.f32 %v512_v22, %v307_v17 }
 0x324   :  { %v514_v27 = vpop.f32.mrf.mxu0  ;;  %v554_v28 = vpop.f32.mrf.mxu1 }
 0x325   :  { %740 = vpow2.f32 %v656_v24  ;;  %v657_v29 = vmul.f32 -1.442695, %v513_v26 }
 0x326   :  { %742 = vpow2.f32 %v658_v25  ;;  %v515_v30 = vpop.f32.mrf.mxu0  ;;  %v691_v31 = vpop.f32.mrf.mxu1 }
 0x327   :  { %744 = vpow2.f32 %v657_v29 }
 0x32a   :  { %v733_v32 = vpop.eup %732 }
 0x32b   :  { %v735_v33 = vpop.eup %734  ;;  %v578_v34 = vadd.f32 1.0, %v733_v32 }
 0x32c   :  { %v737_v35 = vpop.eup %736  ;;  %v580_v36 = vadd.f32 1.0, %v735_v33 }
 0x32d   :  { %v739_v37 = vpop.eup %738  ;;  %746 = vrcp.f32 %v578_v34  ;;  %v579_v38 = vadd.f32 1.0, %v737_v35 }
 0x32e   :  { %748 = vrcp.f32 %v580_v36  ;;  %v581_v39 = vadd.f32 1.0, %v739_v37 }
 0x32f   :  { %750 = vrcp.f32 %v579_v38 }
 0x330   :  { %752 = vrcp.f32 %v581_v39 }
 0x332   :  { %v741_v40 = vpop.eup %740 }
 0x333   :  { %v743_v41 = vpop.eup %742  ;;  %v582_v42 = vadd.f32 1.0, %v741_v40 }
 0x334   :  { %v745_v43 = vpop.eup %744  ;;  %v584_v44 = vadd.f32 1.0, %v743_v41 }
 0x335   :  { %754 = vrcp.f32 %v582_v42  ;;  %v583_v45 = vadd.f32 1.0, %v745_v43 }
 0x336   :  { %756 = vrcp.f32 %v584_v44 }
 0x337   :  { %758 = vrcp.f32 %v583_v45 }
 0x33a   :  { %v747_v46 = vpop.eup %746 }
 0x33b   :  { %v749_v47 = vpop.eup %748  ;;  %599 = vst [vmem:[#allocation11] sm:$0xff] %v747_v46 }
 0x33c   :  { %v751_v48 = vpop.eup %750  ;;  %601 = vst [vmem:[#allocation11 + $0x10] sm:$0xff] %v749_v47 }
 0x33d   :  { %v753_v49 = vpop.eup %752  ;;  %600 = vst [vmem:[#allocation11 + $0x8] sm:$0xff] %v751_v48 }
 0x33e   :  { %602 = vst [vmem:[#allocation11 + $0x18] sm:$0xff] %v753_v49 }
 0x342   :  { %v755_v50 = vpop.eup %754 }
 0x343   :  { %v757_v51 = vpop.eup %756  ;;  %603 = vst [vmem:[#allocation11 + $0x20] sm:$0xff] %v755_v50 }
 0x344   :  { %v759_v52 = vpop.eup %758  ;;  %605 = vst [vmem:[#allocation11 + $0x30] sm:$0xff] %v757_v51 }
 0x345   :  { %604 = vst [vmem:[#allocation11 + $0x28] sm:$0xff] %v759_v52 }
 0x346   :  { %871 = shalt.err (!%p868_p1)
}
 0x347   :  { %615 = dma.vmem_to_hbm [thread:$0]  %s613_s21, 896, %s1016_s9, [#allocation4]  }
 0x348   :  { %886 = dma.done.wait [#allocation4], 896  }
 0x349   :  { %887 = vsyncadd [#allocation4], 4294966400 }
 0x34a   :  { %619 = vsyncpa [#allocation3], 1 }
 0x34b   :  { %620 = vsyncpa [#allocation6], 1 }
 0x34c   :  { %621 = vsyncpa [#allocation9], 1 }
 0x34d   :  { %622 = vsyncpa [#allocation4], 1 }

</bundles_post_ra>
